<compile_context>
chip_gen: v7x
topology: tpu7x:2x2x1
jax: 0.10.0
libtpu: 0.0.40
codegen_flags: <defaults>
</compile_context>

<pallas_src>
import functools

import jax
import jax.numpy as jnp
from jax.experimental import pallas as pl
from jax.experimental.pallas import tpu as pltpu


def _round_up(x, m):
    return ((x + m - 1) // m) * m


def _vmem_capacity_bytes():
    try:
        return int(pltpu.get_tpu_info().vmem_capacity_bytes)
    except Exception:
        return 64 * 1024 * 1024  # conservative (v7x per-TensorCore)


def _apply_act(z, act):
    if act == "relu":
        return jnp.maximum(z, 0.0)
    if act == "tanh":
        return jnp.tanh(z)
    return z


# ----------------------- fused whole-MLP kernel (main path) -----------------
def _fused_mlp_kernel(*refs, activations):
    """Whole-MLP forward for one [tm, input_size] batch tile.

    refs = (x_ref, w0, b0, w1, b1, ..., w{L-1}, b{L-1}, o_ref).
    Weights/biases are grid-invariant full-array VMEM blocks; the activation
    chain stays on-chip and only the final activation is written out.
    """
    n_layers = len(activations)
    x_ref = refs[0]
    o_ref = refs[1 + 2 * n_layers]

    # Feed the MXU bf16 operands; accumulate in f32.
    h = x_ref[...].astype(jnp.bfloat16)
    for l in range(n_layers):
        w = refs[1 + 2 * l][...]           # bf16 [din, dout]
        b = refs[2 + 2 * l][...]           # f32  [1, dout] -> broadcasts
        z = jnp.dot(h, w, preferred_element_type=jnp.float32) + b
        z = _apply_act(z, activations[l])
        if l + 1 < n_layers:
            h = z.astype(jnp.bfloat16)     # keep inter-layer h bf16
        else:
            o_ref[...] = z.astype(o_ref.dtype)


# -------------- per-layer kernel (fallback when weights don't fit) ----------
def _layer_kernel(x_ref, w_ref, b_ref, o_ref, *, act):
    z = jnp.dot(x_ref[...].astype(jnp.bfloat16), w_ref[...],
                preferred_element_type=jnp.float32) + b_ref[...]
    o_ref[...] = _apply_act(z, act).astype(o_ref.dtype)


def fused_mlp(x, params, activations, *, tm=512):
    """Run the full MLP on x: [M, K].

    params: list of (W bf16 [din, dout], b f32 [1, dout]) with dout already
    padded to a multiple of 128 by the caller.  Returns [M, dout_last] in
    x.dtype (padded columns included; caller slices).
    """
    M, K = x.shape
    n_layers = len(params)
    assert len(activations) == n_layers
    N_out = params[-1][0].shape[1]
    x_bytes = jnp.dtype(x.dtype).itemsize

    # Batch tile: multiple of 8 sublanes, as large as possible, but split into
    # >=2 grid steps when the batch allows so both v7x TensorCores get work.
    tm = int(min(tm, _round_up(M, 8)))
    if M > tm:
        tm = int(min(tm, _round_up(pl.cdiv(M, 2), 8)))

    # Honest VMEM estimate: Pallas double-buffers every in_spec (even
    # grid-invariant ones), biases pad to 8 sublanes, and the f32 accumulator
    # plus bf16 h chain needs spill scratch.
    max_dout = max(w.shape[1] for (w, _) in params)
    resident = sum(2 * int(w.size) * w.dtype.itemsize + 2 * 8 * w.shape[1] * 4
                   for (w, _) in params)
    streamed = 2 * tm * K * x_bytes + 2 * tm * N_out * x_bytes
    spill = tm * max_dout * (4 + 2)
    est = resident + streamed + spill

    vmem_cap = _vmem_capacity_bytes()
    budget = int(0.6 * vmem_cap)               # headroom for compiler scratch
    vmem_limit = int(min(max(2 * est, 32 * 1024 * 1024), vmem_cap))

    if est <= budget:
        # ---------------- single fused pallas_call ----------------
        # TODO(synk): for tiny-batch inference the single grid step is weight-
        # DMA latency bound; a cross-pallas_call weight prefetch (semaphore
        # future) would hide the HBM->VMEM copy behind preceding XLA work.
        flat_inputs = [x]
        in_specs = [pl.BlockSpec((tm, K), lambda i: (i, 0))]
        for (w, b) in params:
            din, dout = w.shape
            flat_inputs.append(w)
            in_specs.append(pl.BlockSpec((din, dout), lambda i: (0, 0)))
            flat_inputs.append(b)
            in_specs.append(pl.BlockSpec((1, dout), lambda i: (0, 0)))

        kernel = functools.partial(_fused_mlp_kernel,
                                   activations=tuple(activations))
        return pl.pallas_call(
            kernel,
            out_shape=jax.ShapeDtypeStruct((M, N_out), x.dtype),
            grid_spec=pltpu.PrefetchScalarGridSpec(
                num_scalar_prefetch=0,
                grid=(pl.cdiv(M, tm),),
                in_specs=in_specs,
                out_specs=pl.BlockSpec((tm, N_out), lambda i: (i, 0)),
            ),
            compiler_params=pltpu.CompilerParams(
                dimension_semantics=("parallel",),
                vmem_limit_bytes=vmem_limit,
            ),
        )(*flat_inputs)

    # ---------------- fallback: layer-by-layer, N-tiled ----------------
    # Weights too large to be fully VMEM-resident on this generation; tile the
    # output dimension instead.  Intermediates round-trip HBM in bf16.
    h = x
    for l, ((w, b), act) in enumerate(zip(params, activations)):
        din, dout = w.shape
        tn = min(dout, 512)
        out_dtype = x.dtype if l + 1 == n_layers else jnp.bfloat16
        h = pl.pallas_call(
            functools.partial(_layer_kernel, act=act),
            out_shape=jax.ShapeDtypeStruct((M, dout), out_dtype),
            grid_spec=pltpu.PrefetchScalarGridSpec(
                num_scalar_prefetch=0,
                grid=(pl.cdiv(M, tm), pl.cdiv(dout, tn)),
                in_specs=[pl.BlockSpec((tm, din), lambda i, j: (i, 0)),
                          pl.BlockSpec((din, tn), lambda i, j: (0, j)),
                          pl.BlockSpec((1, tn), lambda i, j: (0, j))],
                out_specs=pl.BlockSpec((tm, tn), lambda i, j: (i, j)),
            ),
            compiler_params=pltpu.CompilerParams(
                dimension_semantics=("parallel", "parallel"),
                vmem_limit_bytes=vmem_limit,
            ),
        )(h, w, b)
    return h


class MLP:
    """JAX/Pallas port of rl_modules/mlp.py::MLP (forward pass only)."""

    def __init__(self, input_size, output_size, n_hidden=1, hidden_dim=256,
                 first_dim=0, add_tanh=False, key=None, dtype=jnp.float32):
        first_dim = max(hidden_dim, first_dim)
        self.add_tanh = add_tanh
        if key is None:
            key = jax.random.PRNGKey(0)

        # (in_dim, out_dim, activation-after-layer)
        dims = [(input_size, first_dim, "relu")]
        cur = first_dim
        for _ in range(n_hidden - 1):
            dims.append((cur, hidden_dim, "relu"))
            cur = hidden_dim
        dims.append((cur, output_size, "tanh" if add_tanh else "none"))
        self.layer_acts = [act for (_, _, act) in dims]

        # Deterministic PyTorch-style init: U(-1/sqrt(fan_in), 1/sqrt(fan_in)).
        # Reference copy kept in f32, unpadded.
        self.params = []
        for (din, dout, _) in dims:
            key, kw, kb = jax.random.split(key, 3)
            bound = 1.0 / (din ** 0.5)
            w = jax.random.uniform(kw, (din, dout), dtype, -bound, bound)
            b = jax.random.uniform(kb, (dout,), dtype, -bound, bound)
            self.params.append((w, b))

        # Kernel params: every layer width padded (once) to a multiple of 128
        # so all matmuls / the final HBM store are lane-dense; padded
        # rows/cols/bias entries are zero so the math is unchanged.  Weights
        # are cast to bf16 once (native MXU operands, half the DMA bytes and
        # half the resident VMEM); biases stay f32 as [1, dout] rows.
        self._out_features = output_size
        self._kernel_params = []
        prev_pad_in = input_size
        for (din, dout, _), (w, b) in zip(dims, self.params):
            dout_p = max(128, _round_up(dout, 128))
            w_p = jnp.zeros((prev_pad_in, dout_p), jnp.float32)
            w_p = w_p.at[:din, :dout].set(w)
            b_p = jnp.zeros((dout_p,), jnp.float32).at[:dout].set(b)
            self._kernel_params.append(
                (w_p.astype(jnp.bfloat16), b_p.reshape(1, dout_p)))
            prev_pad_in = dout_p

    def __call__(self, x):
        # x.view(len(x), -1)
        x = x.reshape(x.shape[0], -1)
        out = fused_mlp(x, self._kernel_params, self.layer_acts)
        if out.shape[1] != self._out_features:
            out = out[:, :self._out_features]
        return out


def _reference(mlp, x):
    x = x.reshape(x.shape[0], -1)
    for (w, b), act in zip(mlp.params, mlp.layer_acts):
        x = x @ w + b
        if act == "relu":
            x = jnp.maximum(x, 0.0)
        elif act == "tanh":
            x = jnp.tanh(x)
    return x


if __name__ == "__main__":
    key = jax.random.PRNGKey(0)
    kx, kp = jax.random.split(key)

    batch, input_size, output_size = 8, 32, 16
    mlp = MLP(input_size, output_size, n_hidden=2, hidden_dim=128,
              add_tanh=True, key=kp)

    x = jax.random.normal(kx, (batch, input_size), jnp.float32)
    out = mlp(x)
    jax.block_until_ready(out)

    ref = _reference(mlp, x)
    assert out.shape == (batch, output_size), out.shape
    # bf16 MXU operands -> tolerance loosened vs. the pure-f32 reference.
    err = float(jnp.max(jnp.abs(out - ref)))
    assert jnp.allclose(out, ref, atol=3e-2, rtol=3e-2), f"mismatch: {err}"
    print("KERNEL_OK")
</pallas_src>

<mosaic_0001>
module attributes {stable_mosaic.version = 11 : i64} {
  func.func @_fused_mlp_kernel(%arg0: i32, %arg1: memref<8x32xf32, #tpu.memory_space<vmem>>, %arg2: memref<32x128xbf16, #tpu.memory_space<vmem>>, %arg3: memref<1x128xf32, #tpu.memory_space<vmem>>, %arg4: memref<128x128xbf16, #tpu.memory_space<vmem>>, %arg5: memref<1x128xf32, #tpu.memory_space<vmem>>, %arg6: memref<128x128xbf16, #tpu.memory_space<vmem>>, %arg7: memref<1x128xf32, #tpu.memory_space<vmem>>, %arg8: memref<8x128xf32, #tpu.memory_space<vmem>>) attributes {dimension_semantics = [#tpu.dimension_semantics<parallel>], iteration_bounds = array<i64: 1>, scalar_prefetch = 0 : i64, scratch_operands = 0 : i64, tpu.core_type = #tpu.core_type<tc>, window_params = [{transform_indices = @transform_0, window_bounds = array<i64: 8, 32>}, {pipeline_mode = #tpu.pipeline_mode<synchronous>, transform_indices = @transform_1, window_bounds = array<i64: 32, 128>}, {pipeline_mode = #tpu.pipeline_mode<synchronous>, transform_indices = @transform_2, window_bounds = array<i64: 1, 128>}, {pipeline_mode = #tpu.pipeline_mode<synchronous>, transform_indices = @transform_3, window_bounds = array<i64: 128, 128>}, {pipeline_mode = #tpu.pipeline_mode<synchronous>, transform_indices = @transform_4, window_bounds = array<i64: 1, 128>}, {pipeline_mode = #tpu.pipeline_mode<synchronous>, transform_indices = @transform_5, window_bounds = array<i64: 128, 128>}, {pipeline_mode = #tpu.pipeline_mode<synchronous>, transform_indices = @transform_6, window_bounds = array<i64: 1, 128>}, {transform_indices = @transform_7, window_bounds = array<i64: 8, 128>}]} {
    %c0 = arith.constant 0 : index
    %c0_0 = arith.constant 0 : index
    %0 = vector.load %arg1[%c0, %c0_0] : memref<8x32xf32, #tpu.memory_space<vmem>>, vector<8x32xf32>
    %1 = arith.truncf %0 : vector<8x32xf32> to vector<8x32xbf16>
    %c0_1 = arith.constant 0 : index
    %c0_2 = arith.constant 0 : index
    %2 = vector.load %arg2[%c0_1, %c0_2] : memref<32x128xbf16, #tpu.memory_space<vmem>>, vector<32x128xbf16>
    %c0_3 = arith.constant 0 : index
    %c0_4 = arith.constant 0 : index
    %3 = vector.load %arg3[%c0_3, %c0_4] : memref<1x128xf32, #tpu.memory_space<vmem>>, vector<1x128xf32>
    %cst = arith.constant dense<0.000000e+00> : vector<8x128xf32>
    %4 = tpu.matmul %1, %2, %cst {dimension_numbers = #tpu.dot_dimension_numbers<[1], [0], [0], [1], [0, 0, 1, 1], [], []>} : vector<8x32xbf16>, vector<32x128xbf16>, vector<8x128xf32> -> vector<8x128xf32>
    %5 = vector.broadcast %3 : vector<1x128xf32> to vector<8x128xf32>
    %6 = arith.addf %4, %5 : vector<8x128xf32>
    %cst_5 = arith.constant 0.000000e+00 : f32
    %7 = vector.broadcast %cst_5 : f32 to vector<8x128xf32>
    %8 = arith.maximumf %6, %7 : vector<8x128xf32>
    %9 = arith.truncf %8 : vector<8x128xf32> to vector<8x128xbf16>
    %c0_6 = arith.constant 0 : index
    %c0_7 = arith.constant 0 : index
    %10 = vector.load %arg4[%c0_6, %c0_7] : memref<128x128xbf16, #tpu.memory_space<vmem>>, vector<128x128xbf16>
    %c0_8 = arith.constant 0 : index
    %c0_9 = arith.constant 0 : index
    %11 = vector.load %arg5[%c0_8, %c0_9] : memref<1x128xf32, #tpu.memory_space<vmem>>, vector<1x128xf32>
    %cst_10 = arith.constant dense<0.000000e+00> : vector<8x128xf32>
    %12 = tpu.matmul %9, %10, %cst_10 {dimension_numbers = #tpu.dot_dimension_numbers<[1], [0], [0], [1], [0, 0, 1, 1], [], []>} : vector<8x128xbf16>, vector<128x128xbf16>, vector<8x128xf32> -> vector<8x128xf32>
    %13 = vector.broadcast %11 : vector<1x128xf32> to vector<8x128xf32>
    %14 = arith.addf %12, %13 : vector<8x128xf32>
    %cst_11 = arith.constant 0.000000e+00 : f32
    %15 = vector.broadcast %cst_11 : f32 to vector<8x128xf32>
    %16 = arith.maximumf %14, %15 : vector<8x128xf32>
    %17 = arith.truncf %16 : vector<8x128xf32> to vector<8x128xbf16>
    %c0_12 = arith.constant 0 : index
    %c0_13 = arith.constant 0 : index
    %18 = vector.load %arg6[%c0_12, %c0_13] : memref<128x128xbf16, #tpu.memory_space<vmem>>, vector<128x128xbf16>
    %c0_14 = arith.constant 0 : index
    %c0_15 = arith.constant 0 : index
    %19 = vector.load %arg7[%c0_14, %c0_15] : memref<1x128xf32, #tpu.memory_space<vmem>>, vector<1x128xf32>
    %cst_16 = arith.constant dense<0.000000e+00> : vector<8x128xf32>
    %20 = tpu.matmul %17, %18, %cst_16 {dimension_numbers = #tpu.dot_dimension_numbers<[1], [0], [0], [1], [0, 0, 1, 1], [], []>} : vector<8x128xbf16>, vector<128x128xbf16>, vector<8x128xf32> -> vector<8x128xf32>
    %21 = vector.broadcast %19 : vector<1x128xf32> to vector<8x128xf32>
    %22 = arith.addf %20, %21 : vector<8x128xf32>
    %23 = math.tanh %22 : vector<8x128xf32>
    %c0_17 = arith.constant 0 : index
    %c0_18 = arith.constant 0 : index
    %24 = vector.load %arg8[%c0_17, %c0_18] : memref<8x128xf32, #tpu.memory_space<vmem>>, vector<8x128xf32>
    tpu.vector_store %arg8[%c0_17, %c0_18], %23 {strides = array<i32>} : memref<8x128xf32, #tpu.memory_space<vmem>>, vector<8x128xf32>,
    return
  }
  func.func @transform_0(%arg0: i32) -> (i32, i32) {
    %c0_i32 = arith.constant 0 : i32
    %c0_i32_0 = arith.constant 0 : i32
    return %arg0, %c0_i32 : i32, i32
  }
  func.func @transform_1(%arg0: i32) -> (i32, i32) {
    %c0_i32 = arith.constant 0 : i32
    %c0_i32_0 = arith.constant 0 : i32
    %c0_i32_1 = arith.constant 0 : i32
    return %c0_i32, %c0_i32_0 : i32, i32
  }
  func.func @transform_2(%arg0: i32) -> (i32, i32) {
    %c0_i32 = arith.constant 0 : i32
    %c0_i32_0 = arith.constant 0 : i32
    %c0_i32_1 = arith.constant 0 : i32
    return %c0_i32, %c0_i32_0 : i32, i32
  }
  func.func @transform_3(%arg0: i32) -> (i32, i32) {
    %c0_i32 = arith.constant 0 : i32
    %c0_i32_0 = arith.constant 0 : i32
    %c0_i32_1 = arith.constant 0 : i32
    return %c0_i32, %c0_i32_0 : i32, i32
  }
  func.func @transform_4(%arg0: i32) -> (i32, i32) {
    %c0_i32 = arith.constant 0 : i32
    %c0_i32_0 = arith.constant 0 : i32
    %c0_i32_1 = arith.constant 0 : i32
    return %c0_i32, %c0_i32_0 : i32, i32
  }
  func.func @transform_5(%arg0: i32) -> (i32, i32) {
    %c0_i32 = arith.constant 0 : i32
    %c0_i32_0 = arith.constant 0 : i32
    %c0_i32_1 = arith.constant 0 : i32
    return %c0_i32, %c0_i32_0 : i32, i32
  }
  func.func @transform_6(%arg0: i32) -> (i32, i32) {
    %c0_i32 = arith.constant 0 : i32
    %c0_i32_0 = arith.constant 0 : i32
    %c0_i32_1 = arith.constant 0 : i32
    return %c0_i32, %c0_i32_0 : i32, i32
  }
  func.func @transform_7(%arg0: i32) -> (i32, i32) {
    %c0_i32 = arith.constant 0 : i32
    %c0_i32_0 = arith.constant 0 : i32
    return %arg0, %c0_i32 : i32, i32
  }
}

</mosaic_0001>

<bundles_post_ra>
// kernel: tpu_custom_call.1
= control target key start
LH: loop header
LB: loop body
LE: loop exit
PB: predicated region body
PF: predicated region fallthrough
CT: control target
= control target key end

     0   :  { %12 = vsyncpa [#allocation3], 0  ;;  %s784_s0 = inlined_call_operand.hbm [shape: f32[8,32], index: 0, kind: input, shape index: {}]   ;;  %s785_s1 = inlined_call_operand.hbm [shape: bf16[32,128], index: 1, kind: input, shape index: {}]   ;;  %s786_s2 = inlined_call_operand.vmem [shape: f32[1,128], index: 2, kind: input, shape index: {}]   ;;  %s787_s3 = inlined_call_operand.hbm [shape: bf16[128,128], index: 3, kind: input, shape index: {}]   ;;  %s788_s4 = inlined_call_operand.vmem [shape: f32[1,128], index: 4, kind: input, shape index: {}]   ;;  %s789_s5 = inlined_call_operand.hbm [shape: bf16[128,128], index: 5, kind: input, shape index: {}]   ;;  %s790_s6 = inlined_call_operand.vmem [shape: f32[1,128], index: 6, kind: input, shape index: {}]   ;;  %s791_s7 = inlined_call_operand.hbm [shape: f32[8,128], index: 7, kind: output, shape index: {}]  }
   0x1   :  { %13 = vsyncpa [#allocation6], 0 }
   0x2   :  { %14 = vsyncpa [#allocation9], 0 }
   0x3   :  { %15 = vsyncpa [#allocation4], 0  ;;  %s633_s24 = smov [#allocation5]   ;;  %s515_s28 = scalar_lea.hbm %s785_s1, 256 }
   0x4   :  { %s31_s25 = sshll.u32 %s633_s24, 4  ;;  %p516_p0 = scmp.ne.s32.totalorder %s785_s1, %s515_s28  ;;  %s32_s25 = int_to_ptr.vmem [resolvable:$true] %s31_s25 }
   0x5   :  { %p519_p1 = scmp.lt.u32.totalorder %s515_s28, %s785_s1 }
   0x7   :  { %p521_p2 = pnand %p519_p1, %p516_p0 }
   0x9   :  { %524 = shalt.err (!%p521_p2)
}
   0xa   :  { %s525_s10 = scalar_lea.vmem %s32_s25, 256  ;;  %p530_p4 = scmp.lt.s32.totalorder %s32_s25, %s32_s25 }
   0xb   :  { %p526_p3 = scmp.ne.s32.totalorder %s32_s25, %s525_s10  ;;  %p531_p5 = scmp.lt.s32.totalorder %s525_s10, %s525_s10 }
   0xd   :  { %p532_p6 = por %p531_p5, %p530_p4 }
   0xf   :  { %p533_p7 = pnand %p532_p6, %p526_p3 }
  0x11   :  { %536 = shalt.err (!%p533_p7)
}
  0x12   :  { %s634_s11 = smov 64   ;;  %s635_s12 = smov 4  }
  0x13   :  { %37 = dma.hbm_to_vmem [thread:$0]  %s785_s1, 256, %s32_s25, [#allocation6], %s634_s11, %s634_s11, %s635_s12  }
  0x14   :  { %s636_s15 = smov [#allocation2]   ;;  %s637_s17 = smov [#allocation7]  }
  0x15   :  { %s22_s16 = sshll.u32 %s636_s15, 4  ;;  %s45_s18 = sshll.u32 %s637_s17, 4  ;;  %s23_s16 = int_to_ptr.vmem [resolvable:$true] %s22_s16  ;;  %s46_s18 = int_to_ptr.vmem [resolvable:$true] %s45_s18 }
  0x16   :  { %s537_s21 = scalar_lea.hbm %s784_s0, 128 }
  0x17   :  { %p538_p8 = scmp.ne.s32.totalorder %s784_s0, %s537_s21  ;;  %p541_p9 = scmp.lt.u32.totalorder %s537_s21, %s784_s0 }
  0x19   :  { %p543_p10 = pnand %p541_p9, %p538_p8 }
  0x1b   :  { %546 = shalt.err (!%p543_p10)
}
  0x1c   :  { %s547_s1 = scalar_lea.vmem %s23_s16, 128  ;;  %p552_p12 = scmp.lt.s32.totalorder %s23_s16, %s23_s16 }
  0x1d   :  { %p548_p11 = scmp.ne.s32.totalorder %s23_s16, %s547_s1  ;;  %p553_p13 = scmp.lt.s32.totalorder %s547_s1, %s547_s1 }
  0x1f   :  { %p554_p0 = por %p553_p13, %p552_p12 }
  0x21   :  { %p555_p1 = pnand %p554_p0, %p548_p11 }
  0x23   :  { %558 = shalt.err (!%p555_p1)
}
  0x24   :  { %25 = dma.hbm_to_vmem [thread:$0]  %s784_s0, 128, %s23_s16, [#allocation3]  }
  0x25   :  { %s559_s30 = scalar_lea.hbm %s787_s3, 1024 }
  0x26   :  { %p560_p2 = scmp.ne.s32.totalorder %s787_s3, %s559_s30  ;;  %p563_p3 = scmp.lt.u32.totalorder %s559_s30, %s787_s3 }
  0x28   :  { %p565_p4 = pnand %p563_p3, %p560_p2 }
  0x2a   :  { %568 = shalt.err (!%p565_p4)
}
  0x2b   :  { %s569_s14 = scalar_lea.vmem %s46_s18, 1024  ;;  %p574_p6 = scmp.lt.s32.totalorder %s46_s18, %s46_s18 }
  0x2c   :  { %p570_p5 = scmp.ne.s32.totalorder %s46_s18, %s569_s14  ;;  %p575_p7 = scmp.lt.s32.totalorder %s569_s14, %s569_s14 }
  0x2e   :  { %p576_p8 = por %p575_p7, %p574_p6 }
  0x30   :  { %p577_p9 = pnand %p576_p8, %p570_p5 }
  0x32   :  { %580 = shalt.err (!%p577_p9)
}
  0x33   :  { %51 = dma.hbm_to_vmem [thread:$0]  %s787_s3, 1024, %s46_s18, [#allocation6], %s634_s11, %s634_s11, %s635_s12  }
  0x34   :  { %s638_s16 = smov [#allocation8]   ;;  %s581_s21 = scalar_lea.hbm %s789_s5, 1024 }
  0x35   :  { %s59_s17 = sshll.u32 %s638_s16, 4  ;;  %p582_p10 = scmp.ne.s32.totalorder %s789_s5, %s581_s21  ;;  %s60_s17 = int_to_ptr.vmem [resolvable:$true] %s59_s17 }
  0x36   :  { %p585_p11 = scmp.lt.u32.totalorder %s581_s21, %s789_s5 }
  0x38   :  { %p587_p12 = pnand %p585_p11, %p582_p10 }
  0x3a   :  { %590 = shalt.err (!%p587_p12)
}
  0x3b   :  { %s591_s1 = scalar_lea.vmem %s60_s17, 1024  ;;  %p596_p0 = scmp.lt.s32.totalorder %s60_s17, %s60_s17 }
  0x3c   :  { %p592_p13 = scmp.ne.s32.totalorder %s60_s17, %s591_s1  ;;  %p597_p1 = scmp.lt.s32.totalorder %s591_s1, %s591_s1 }
  0x3e   :  { %p598_p2 = por %p597_p1, %p596_p0 }
  0x40   :  { %p599_p3 = pnand %p598_p2, %p592_p13 }
  0x42   :  { %602 = shalt.err (!%p599_p3)
}
  0x43   :  { %65 = dma.hbm_to_vmem [thread:$0]  %s789_s5, 1024, %s60_s17, [#allocation9], %s634_s11, %s634_s11, %s635_s12  }
  0x44   :  { %625 = dma.done.wait [#allocation3], 128  }
  0x45   :  { %626 = vsyncadd [#allocation3], 4294967168 }
  0x46   :  { %627 = dma.done.wait [#allocation6], 1280  }
  0x47   :  { %628 = vsyncadd [#allocation6], 4294966016 }
  0x48   :  { %629 = dma.done.wait [#allocation9], 1024  }
  0x49   :  { %630 = vsyncadd [#allocation9], 4294966272  ;;  %v639_v0 = vmov 0.0   ;;  %vm640_vm0 = vmmov 0   ;;  %v495_v1 = vld [vmem:[#allocation5] sm:$0xff]   ;;  %v496_v2 = vld [vmem:[#allocation5 + $0x8] sm:$0xff]  }
  0x4a   :  { %438 = vmatprep.subr.bf16.mxu0 %v639_v0  ;;  %442 = vmatprep.mubr.msk.bf16.mxu0 %vm640_vm0, %v639_v0  ;;  %v81_v3 = vld [vmem:[#allocation2] sm:$0xff]  ;;  %v497_v4 = vld [vmem:[#allocation7] sm:$0xff]   ;;  %vm106_vm1 = vcmask 261120   ;;  %v499_v7 = vld [vmem:[#allocation7 + $0x10] sm:$0xff]   ;;  %s641_s28 = smov [#allocation10]  }
  0x4b   :  { %446 = vmatprep.subr.bf16.mxu1 %v639_v0  ;;  %462 = vmatprep.mubr.msk.bf16.mxu1 %vm640_vm0, %v639_v0  ;;  %v82_v5 = vpack.c.bf16 %v81_v3, %v81_v3  ;;  %v498_v6 = vld [vmem:[#allocation7 + $0x8] sm:$0xff]   ;;  %v500_v8 = vld [vmem:[#allocation7 + $0x18] sm:$0xff]   ;;  %v501_v9 = vld [vmem:[#allocation7 + $0x20] sm:$0xff]  }
  0x4c   :  { %439 = vmatpush3.bf16.msra.mxu0 %v495_v1  ;;  %447 = vmatpush3.bf16.msra.mxu1 %v497_v4  ;;  %v502_v10 = vld [vmem:[#allocation7 + $0x28] sm:$0xff]   ;;  %v503_v11 = vld [vmem:[#allocation7 + $0x30] sm:$0xff]   ;;  %v504_v12 = vld [vmem:[#allocation7 + $0x38] sm:$0xff]  }
  0x4d   :  { %440 = vmatprep.subr.bf16.mxu0 %v639_v0  ;;  %448 = vmatprep.subr.bf16.mxu1 %v639_v0  ;;  %v505_v13 = vld [vmem:[#allocation8] sm:$0xff]   ;;  %v506_v14 = vld [vmem:[#allocation8 + $0x8] sm:$0xff]   ;;  %v507_v15 = vld [vmem:[#allocation8 + $0x10] sm:$0xff]  }
  0x4e   :  { %v508_v16 = vld [vmem:[#allocation8 + $0x18] sm:$0xff]   ;;  %v509_v17 = vld [vmem:[#allocation8 + $0x20] sm:$0xff]   ;;  %v510_v18 = vld [vmem:[#allocation8 + $0x28] sm:$0xff]  }
  0x4f   :  { %v395_v19 = vld [vmem:[%s786_s2] ss:$0 sm:$0xff]  ;;  %v511_v27 = vld [vmem:[#allocation8 + $0x30] sm:$0xff]   ;;  %v512_v28 = vld [vmem:[#allocation8 + $0x38] sm:$0xff]  }
  0x50   :  { %441 = vmatpush3.bf16.msra.mxu0 %v496_v2  ;;  %449 = vmatpush3.bf16.msra.mxu1 %v498_v6  ;;  %v399_v29 = vld [vmem:[%s788_s4] ss:$0 sm:$0xff]  ;;  %s384_s4 = sshll.u32 %s641_s28, 4  ;;  %s385_s4 = int_to_ptr.vmem [resolvable:$true] %s384_s4 }
  0x51   :  { %466 = vmatprep.subr.bf16.mxu0 %v639_v0  ;;  %450 = vmatprep.subr.bf16.mxu1 %v639_v0  ;;  %v408_v37 = vld [vmem:[%s790_s6] ss:$0 sm:$0xff]  ;;  %s603_s29 = scalar_lea.vmem %s385_s4, 128  ;;  %p608_p5 = scmp.lt.s32.totalorder %s385_s4, %s385_s4 }
  0x52   :  { %p604_p4 = scmp.ne.s32.totalorder %s385_s4, %s603_s29  ;;  %p609_p6 = scmp.lt.s32.totalorder %s603_s29, %s603_s29 }
  0x53   :  { %443 = vmatmul.mubr.msk.bf16.vlgmr.msra.gmra.mrb[0].mxu0 %vm106_vm1, %v82_v5 }
  0x54   :  { %482 = vmatprep.mubr.msk.bf16.mxu0 %vm640_vm0, %v639_v0  ;;  %451 = vmatpush3.bf16.msra.mxu1 %v499_v7  ;;  %p610_p7 = por %p609_p6, %p608_p5 }
  0x55   :  { %452 = vmatprep.subr.bf16.mxu1 %v639_v0  ;;  %467 = vmatpush3.bf16.msra.mxu0 %v505_v13 }
  0x56   :  { %468 = vmatprep.subr.bf16.mxu0 %v639_v0  ;;  %p611_p8 = pnand %p610_p7, %p604_p4 }
  0x58   :  { %453 = vmatpush3.bf16.msra.mxu1 %v500_v8 }
  0x59   :  { %454 = vmatprep.subr.bf16.mxu1 %v639_v0  ;;  %469 = vmatpush3.bf16.msra.mxu0 %v506_v14 }
  0x5a   :  { %470 = vmatprep.subr.bf16.mxu0 %v639_v0 }
  0x5c   :  { %455 = vmatpush3.bf16.msra.mxu1 %v501_v9 }
  0x5d   :  { %456 = vmatprep.subr.bf16.mxu1 %v639_v0  ;;  %471 = vmatpush3.bf16.msra.mxu0 %v507_v15 }
  0x5e   :  { %472 = vmatprep.subr.bf16.mxu0 %v639_v0 }
  0x60   :  { %457 = vmatpush3.bf16.msra.mxu1 %v502_v10 }
  0x61   :  { %458 = vmatprep.subr.bf16.mxu1 %v639_v0  ;;  %473 = vmatpush3.bf16.msra.mxu0 %v508_v16 }
  0x62   :  { %474 = vmatprep.subr.bf16.mxu0 %v639_v0 }
  0x64   :  { %459 = vmatpush3.bf16.msra.mxu1 %v503_v11 }
  0x65   :  { %460 = vmatprep.subr.bf16.mxu1 %v639_v0  ;;  %475 = vmatpush3.bf16.msra.mxu0 %v509_v17 }
  0x66   :  { %476 = vmatprep.subr.bf16.mxu0 %v639_v0 }
  0x68   :  { %461 = vmatpush3.bf16.msra.mxu1 %v504_v12 }
  0x69   :  { %477 = vmatpush3.bf16.msra.mxu0 %v510_v18 }
  0x6a   :  { %478 = vmatprep.subr.bf16.mxu0 %v639_v0 }
  0x6d   :  { %479 = vmatpush3.bf16.msra.mxu0 %v511_v27 }
  0x6e   :  { %480 = vmatprep.subr.bf16.mxu0 %v639_v0 }
  0x71   :  { %481 = vmatpush3.bf16.msra.mxu0 %v512_v28 }
 0x126   :  { %v144_v20 = vpop.f32.mrb[0].mxu0 }
 0x127   :  { %v145_v21 = vadd.f32 %v395_v19, %v144_v20  ;;  %v444_v22 = vpop.f32.mrb[1].mxu0 }
 0x128   :  { %v147_v23 = vpop.f32.mrb[2].mxu0 }
 0x129   :  { %v150_v24 = vmax.f32 %v145_v21, 0.0  ;;  %v445_v25 = vpop.f32.mrb[3].mxu0 }
 0x12b   :  { %v151_v26 = vpack.c.bf16 %v150_v24, %v150_v24 }
 0x12d   :  { %463 = vmatmul.mubr.bf16.vlgmr.msra.gmra.mrb[0].mxu1 %v151_v26 }
 0x200   :  { %v257_v30 = vpop.f32.mrb[0].mxu1 }
 0x201   :  { %v258_v31 = vadd.f32 %v399_v29, %v257_v30  ;;  %v464_v32 = vpop.f32.mrb[1].mxu1 }
 0x202   :  { %v260_v33 = vpop.f32.mrb[2].mxu1 }
 0x203   :  { %v263_v34 = vmax.f32 %v258_v31, 0.0  ;;  %v465_v35 = vpop.f32.mrb[3].mxu1 }
 0x205   :  { %v264_v36 = vpack.c.bf16 %v263_v34, %v263_v34 }
 0x207   :  { %483 = vmatmul.mubr.bf16.vlgmr.msra.gmra.mrb[4].mxu0 %v264_v36 }
 0x2da   :  { %v370_v38 = vpop.f32.mrb[4].mxu0 }
 0x2db   :  { %v371_v39 = vadd.f32 %v408_v37, %v370_v38  ;;  %v484_v40 = vpop.f32.mrb[5].mxu0 }
 0x2dc   :  { %v373_v41 = vpop.f32.mrb[6].mxu0 }
 0x2dd   :  { %513 = vtanh.f32 %v371_v39  ;;  %v485_v42 = vpop.f32.mrb[7].mxu0 }
 0x2e7   :  { %v514_v43 = vpop.eup %513 }
 0x2e8   :  { %377 = vst [vmem:[#allocation10] sm:$0xff] %v514_v43 }
 0x2e9   :  { %614 = shalt.err (!%p611_p8)
}
 0x2ea   :  { %s615_s8 = scalar_lea.hbm %s791_s7, 128 }
 0x2eb   :  { %p616_p9 = scmp.ne.s32.totalorder %s791_s7, %s615_s8  ;;  %p619_p10 = scmp.lt.u32.totalorder %s615_s8, %s791_s7 }
 0x2ed   :  { %p621_p11 = pnand %p619_p10, %p616_p9 }
 0x2ef   :  { %624 = shalt.err (!%p621_p11)
}
 0x2f0   :  { %387 = dma.vmem_to_hbm [thread:$0]  %s385_s4, 128, %s791_s7, [#allocation4]  }
 0x2f1   :  { %631 = dma.done.wait [#allocation4], 128  }
 0x2f2   :  { %632 = vsyncadd [#allocation4], 4294967168 }
 0x2f3   :  { %391 = vsyncpa [#allocation3], 1 }
 0x2f4   :  { %392 = vsyncpa [#allocation6], 1 }
 0x2f5   :  { %393 = vsyncpa [#allocation9], 1 }
 0x2f6   :  { %394 = vsyncpa [#allocation4], 1 }

</bundles_post_ra>
